<compile_context>
chip_gen: v7x
topology: tpu7x:2x2x1
jax: 0.10.0
libtpu: 0.0.40
codegen_flags: <defaults>
</compile_context>

<pallas_src>
import functools

import numpy as np
import jax
import jax.numpy as jnp
from jax.experimental import pallas as pl
from jax.experimental.pallas import tpu as pltpu


# ----------------------------------------------------------------------------
# FSQ / ResidualFSQ constants (buffers in the PyTorch module)
# ----------------------------------------------------------------------------
def fsq_constants(levels, num_quantizers):
    """Raw per-channel FSQ constants (numpy, float64 precision)."""
    lv = np.asarray(levels, dtype=np.float64)
    eps = 1e-3
    half_l = (lv - 1.0) * (1.0 + eps) / 2.0                       # FSQ.bound half_l
    offset = np.where(np.asarray(levels) % 2 == 0, 0.5, 0.0).astype(np.float64)
    shift = np.arctanh(offset / half_l)
    half_width = (np.asarray(levels) // 2).astype(np.float64)     # levels // 2
    basis = np.concatenate([[1.0], np.cumprod(lv[:-1])])
    scales = np.stack([(lv - 1.0) ** (-q) for q in range(num_quantizers)])
    return dict(half_l=half_l, offset=offset, shift=shift,
                half_width=half_width, basis=basis, scales=scales)


def pack_kernel_constants(levels, num_quantizers, groups):
    """Pack kernel constant tables.

    Returns:
      table      (groups*C, 3 + 2Q) float32:
                 [half_l, shift, offset] then per quantizer
                 [inv_scale = (levels-1)**q (exact), qscale = scale / half_width],
                 tiled per group (all groups share the same levels).
      basis_blk  (groups, groups*C) float32 block-diagonal basis rows.
      idx_offset float static scalar sum(half_width * basis) (same per group).
    """
    lv = np.asarray(levels, dtype=np.float64)
    c = fsq_constants(levels, num_quantizers)
    cols = [c["half_l"], c["shift"], c["offset"]]
    for q in range(num_quantizers):
        cols.append((lv - 1.0) ** q)                      # exact integer reciprocal of scale
        cols.append(c["scales"][q] / c["half_width"])     # scale / half_width
    per_group = np.stack(cols, axis=1)                    # (C, 3 + 2Q)
    table = np.tile(per_group, (groups, 1)).astype(np.float32)          # (G*C, 3 + 2Q)
    basis_blk = np.kron(np.eye(groups), c["basis"][None, :]).astype(np.float32)  # (G, G*C)
    idx_offset = float(np.sum(c["half_width"] * c["basis"]))
    return table, basis_blk, idx_offset


# ----------------------------------------------------------------------------
# Pallas kernel: one token-tile step of GroupedResidualFSQ (all groups fused)
# ----------------------------------------------------------------------------
def _grouped_rfsq_kernel(x_ref, w_in_ref, b_in_ref, w_out_ref, b_out_ref,
                         basis_ref, c_ref, q_ref, idx_ref, *,
                         num_quantizers, groups, idx_offset):
    # refs (per grid step m):
    #   x_ref     : (Tm, D)        natural token-major block of the input
    #   w_in_ref  : (G*C, D)       block-diagonal project_in weights (all groups)
    #   b_in_ref  : (G*C, 1)
    #   w_out_ref : (D, G*C)       block-diagonal project_out weights
    #   b_out_ref : (D, 1)
    #   basis_ref : (G, G*C)       block-diagonal codebook basis rows
    #   c_ref     : (G*C, 3+2Q)    [half_l, shift, offset, (inv_scale, qscale)*Q]
    #   q_ref     : (Tm, D)        quantized output (natural layout)
    #   idx_ref   : (Q*G, Tm)      int32 codebook indices, lane-dense rows
    half_l = c_ref[:, 0:1]                                          # (G*C, 1)
    shift = c_ref[:, 1:2]
    offset = c_ref[:, 2:3]

    # Tokens onto the 128-lane axis (XLU relayout, hidden under the input DMA).
    x_cf = jnp.transpose(x_ref[...]).astype(jnp.float32)            # (D, Tm)

    # project_in for all groups at once (block-diagonal): (G*C, D) @ (D, Tm)
    z = jnp.dot(w_in_ref[...], x_cf,
                preferred_element_type=jnp.float32) + b_in_ref[...]  # (G*C, Tm)

    residual = z
    for qi in range(num_quantizers):
        inv_scale = c_ref[:, 3 + 2 * qi:4 + 2 * qi]                 # (levels-1)**qi (exact)
        qscale = c_ref[:, 4 + 2 * qi:5 + 2 * qi]                    # scale / half_width
        zs = residual * inv_scale                                   # == residual / scale
        bounded = jnp.tanh(zs + shift) * half_l - offset            # FSQ.bound
        r = jnp.round(bounded)                                      # integer codes per channel
        # codes_to_indices per group: block-diagonal basis matmul on the MXU.
        # sum_g((r + half_width) * basis) == basis_blk @ r + static offset
        idx_f = jnp.dot(basis_ref[...], r,
                        preferred_element_type=jnp.float32) + idx_offset  # (G, Tm)
        idx_ref[qi * groups:(qi + 1) * groups, :] = jnp.round(idx_f).astype(jnp.int32)
        residual = residual - r * qscale                            # residual -= quantized

    quant_sum = z - residual                                        # == sum_q quantized_q
    # project_out (block-diagonal), then back to token-major for a natural-layout store.
    out_cf = jnp.dot(w_out_ref[...], quant_sum,
                     preferred_element_type=jnp.float32) + b_out_ref[...]  # (D, Tm)
    q_ref[...] = jnp.transpose(out_cf).astype(q_ref.dtype)


# ----------------------------------------------------------------------------
# Wrapper
# ----------------------------------------------------------------------------
def grouped_residual_fsq_forward(x, params, *, levels, num_quantizers, groups, tile_m=4096):
    """x: (B, N, dim). Returns (quantized (B,N,dim), all_indices (groups,B,N,Q))."""
    B, N, dim = x.shape
    assert dim % groups == 0
    dg = dim // groups
    C = len(levels)
    Q = num_quantizers
    GC = groups * C
    M = B * N

    # Natural token-major layout: contiguous reshape only, no extra HBM pass.
    x_flat = x.reshape(M, dim)

    # Lane tile: multiple of 128, as large as requested (grid-step overhead bound otherwise).
    tile = min(tile_m, ((M + 127) // 128) * 128)
    tile = max(128, (tile // 128) * 128)
    Mp = ((M + tile - 1) // tile) * tile
    if Mp != M:
        x_flat = jnp.pad(x_flat, ((0, Mp - M), (0, 0)))

    # Block-diagonal parameters: all groups fused into one 8-sublane channel block.
    w_in_blk = jax.scipy.linalg.block_diag(
        *[params["w_in"][g] for g in range(groups)]).astype(jnp.float32)    # (G*C, dim)
    w_out_blk = jax.scipy.linalg.block_diag(
        *[params["w_out"][g] for g in range(groups)]).astype(jnp.float32)   # (dim, G*C)
    b_in_blk = params["b_in"].reshape(GC, 1).astype(jnp.float32)
    b_out_blk = params["b_out"].reshape(dim, 1).astype(jnp.float32)

    table, basis_blk, idx_offset = pack_kernel_constants(levels, Q, groups)
    const = jnp.asarray(table)                                      # (G*C, 3 + 2Q)
    basis = jnp.asarray(basis_blk)                                  # (G, G*C)

    kernel = functools.partial(_grouped_rfsq_kernel,
                               num_quantizers=Q, groups=groups, idx_offset=idx_offset)

    itemsize = int(np.dtype(x.dtype).itemsize)
    flops = int(4 * GC * dim * Mp + 2 * groups * GC * Q * Mp)       # projections + basis matmuls
    transcend = int(GC * Q * Mp)                                    # tanh count
    bytes_acc = int(itemsize * 2 * dim * Mp + 4 * Q * groups * Mp)

    # VMEM budget: in/out blocks are lane-padded to 128; double-buffered; plus slack
    # for the channels-first intermediates. Keeps big tiles safe on v5e's 16 MiB default.
    dpad = ((dim + 127) // 128) * 128
    vmem_bytes = 2 * 2 * tile * dpad * itemsize + 2 * Q * groups * tile * 4 + (8 << 20)
    vmem_limit = int(min(max(vmem_bytes, 32 << 20), 64 << 20))

    quant_flat, idx_qg = pl.pallas_call(
        kernel,
        out_shape=[
            jax.ShapeDtypeStruct((Mp, dim), x.dtype),
            jax.ShapeDtypeStruct((Q * groups, Mp), jnp.int32),
        ],
        grid=(Mp // tile,),
        in_specs=[
            pl.BlockSpec((tile, dim), lambda m: (m, 0)),            # x, natural layout
            pl.BlockSpec((GC, dim), lambda m: (0, 0)),              # W_in block-diag
            pl.BlockSpec((GC, 1), lambda m: (0, 0)),                # b_in
            pl.BlockSpec((dim, GC), lambda m: (0, 0)),              # W_out block-diag
            pl.BlockSpec((dim, 1), lambda m: (0, 0)),               # b_out
            pl.BlockSpec((groups, GC), lambda m: (0, 0)),           # basis block-diag
            pl.BlockSpec((GC, 3 + 2 * Q), lambda m: (0, 0)),        # constants
        ],
        out_specs=[
            pl.BlockSpec((tile, dim), lambda m: (m, 0)),            # quantized (natural layout)
            pl.BlockSpec((Q * groups, tile), lambda m: (0, m)),     # indices (lane-dense rows)
        ],
        compiler_params=pltpu.CompilerParams(
            dimension_semantics=("parallel",),                      # token-tile axis feeds v7x's 2 TCs
            vmem_limit_bytes=vmem_limit),
        cost_estimate=pl.CostEstimate(
            flops=flops, transcendentals=transcend, bytes_accessed=bytes_acc),
    )(x_flat, w_in_blk, b_in_blk, w_out_blk, b_out_blk, basis, const)

    # Back to the module's layouts (contiguous reshapes; only the small int32
    # index tensor needs a transpose, ~1/8 of the activation traffic).
    quantized = quant_flat[:M].reshape(B, N, dim)
    all_indices = idx_qg[:, :M].reshape(Q, groups, B, N).transpose(1, 2, 3, 0)
    return quantized, all_indices


# ----------------------------------------------------------------------------
# Pure-JAX reference (mirrors the PyTorch forward) for a sanity check
# ----------------------------------------------------------------------------
def ref_forward(x, params, *, levels, num_quantizers, groups):
    B, N, dim = x.shape
    dg = dim // groups
    c = fsq_constants(levels, num_quantizers)
    half_l = jnp.asarray(c["half_l"], jnp.float32)
    offset = jnp.asarray(c["offset"], jnp.float32)
    shift = jnp.asarray(c["shift"], jnp.float32)
    half_width = jnp.asarray(c["half_width"], jnp.float32)
    basis = jnp.asarray(c["basis"], jnp.float32)
    scales = jnp.asarray(c["scales"], jnp.float32)
    hp = jax.lax.Precision.HIGHEST
    out_chunks, idx_chunks = [], []
    for g in range(groups):
        xg = x[..., g * dg:(g + 1) * dg]
        z = jnp.einsum("bnd,cd->bnc", xg, params["w_in"][g], precision=hp) + params["b_in"][g, :, 0]
        residual, qsum, idxs = z, jnp.zeros_like(z), []
        for qi in range(num_quantizers):
            s = scales[qi]
            zs = residual / s
            bounded = jnp.tanh(zs + shift) * half_l - offset
            codes = jnp.round(bounded) / half_width
            idx = jnp.round(jnp.sum((codes * half_width + half_width) * basis, axis=-1)).astype(jnp.int32)
            idxs.append(idx)
            quantized = codes * s
            residual = residual - quantized
            qsum = qsum + quantized
        out = jnp.einsum("bnc,dc->bnd", qsum, params["w_out"][g], precision=hp) + params["b_out"][g, :, 0]
        out_chunks.append(out)
        idx_chunks.append(jnp.stack(idxs, axis=-1))
    return jnp.concatenate(out_chunks, axis=-1), jnp.stack(idx_chunks, axis=0)


# ----------------------------------------------------------------------------
if __name__ == "__main__":
    # module config
    LEVELS = (8, 5, 5, 5)        # codebook_dim = 4, codebook_size = 1000
    NUM_QUANTIZERS = 2
    DIM = 32
    GROUPS = 2
    DG = DIM // GROUPS           # 16 != 4  => project_in / project_out Linear layers
    C = len(LEVELS)

    B, N = 2, 128                # M = 256 tokens -> single 256-lane tile, grid (1,)

    key = jax.random.PRNGKey(0)
    kx, k1, k2, k3, k4 = jax.random.split(key, 5)
    x = 0.5 * jax.random.normal(kx, (B, N, DIM), jnp.float32)

    # Linear params per group in native nn.Linear layout: weight (out, in).
    params = {
        "w_in":  jax.random.normal(k1, (GROUPS, C, DG), jnp.float32) / np.sqrt(DG),
        "b_in":  0.01 * jax.random.normal(k2, (GROUPS, C, 1), jnp.float32),
        "w_out": jax.random.normal(k3, (GROUPS, DG, C), jnp.float32) / np.sqrt(C),
        "b_out": 0.01 * jax.random.normal(k4, (GROUPS, DG, 1), jnp.float32),
    }

    # TODO(synk): quantize_dropout (training-only stochastic path) and distributed
    # seed sync are not represented; this implements the deterministic eval forward.
    # Note: float32 index accumulation is exact only for codebook_size < 2**24.

    quant_k, idx_k = grouped_residual_fsq_forward(
        x, params, levels=LEVELS, num_quantizers=NUM_QUANTIZERS, groups=GROUPS)
    jax.block_until_ready(quant_k)
    jax.block_until_ready(idx_k)

    quant_r, idx_r = ref_forward(
        x, params, levels=LEVELS, num_quantizers=NUM_QUANTIZERS, groups=GROUPS)

    assert quant_k.shape == (B, N, DIM) and quant_k.dtype == jnp.float32
    assert idx_k.shape == (GROUPS, B, N, NUM_QUANTIZERS) and idx_k.dtype == jnp.int32

    idx_match = float(np.mean(np.asarray(idx_k) == np.asarray(idx_r)))
    qdiff = np.abs(np.asarray(quant_k) - np.asarray(quant_r))
    # tolerate a vanishing fraction of round-boundary flips from matmul / tanh precision
    assert idx_match > 0.99, f"index mismatch fraction too high: {1 - idx_match}"
    assert float(np.quantile(qdiff, 0.99)) < 1e-3, f"quantized mismatch: {qdiff.max()}"

    print("KERNEL_OK")
</pallas_src>

<mosaic_0001>
module attributes {stable_mosaic.version = 11 : i64} {
  func.func @_grouped_rfsq_kernel(%arg0: i32, %arg1: memref<256x32xf32, #tpu.memory_space<vmem>>, %arg2: memref<8x32xf32, #tpu.memory_space<vmem>>, %arg3: memref<8x1xf32, #tpu.memory_space<vmem>>, %arg4: memref<32x8xf32, #tpu.memory_space<vmem>>, %arg5: memref<32x1xf32, #tpu.memory_space<vmem>>, %arg6: memref<2x8xf32, #tpu.memory_space<vmem>>, %arg7: memref<8x7xf32, #tpu.memory_space<vmem>>, %arg8: memref<256x32xf32, #tpu.memory_space<vmem>>, %arg9: memref<4x256xi32, #tpu.memory_space<vmem>>) attributes {dimension_semantics = [#tpu.dimension_semantics<parallel>], iteration_bounds = array<i64: 1>, scalar_prefetch = 0 : i64, scratch_operands = 0 : i64, tpu.core_type = #tpu.core_type<tc>, window_params = [{transform_indices = @transform_0, window_bounds = array<i64: 256, 32>}, {pipeline_mode = #tpu.pipeline_mode<synchronous>, transform_indices = @transform_1, window_bounds = array<i64: 8, 32>}, {pipeline_mode = #tpu.pipeline_mode<synchronous>, transform_indices = @transform_2, window_bounds = array<i64: 8, 1>}, {pipeline_mode = #tpu.pipeline_mode<synchronous>, transform_indices = @transform_3, window_bounds = array<i64: 32, 8>}, {pipeline_mode = #tpu.pipeline_mode<synchronous>, transform_indices = @transform_4, window_bounds = array<i64: 32, 1>}, {pipeline_mode = #tpu.pipeline_mode<synchronous>, transform_indices = @transform_5, window_bounds = array<i64: 2, 8>}, {pipeline_mode = #tpu.pipeline_mode<synchronous>, transform_indices = @transform_6, window_bounds = array<i64: 8, 7>}, {transform_indices = @transform_7, window_bounds = array<i64: 256, 32>}, {transform_indices = @transform_8, window_bounds = array<i64: 4, 256>}]} {
    %c0 = arith.constant 0 : index
    %c0_0 = arith.constant 0 : index
    %0 = vector.load %arg7[%c0, %c0_0] : memref<8x7xf32, #tpu.memory_space<vmem>>, vector<8x1xf32>
    %c0_1 = arith.constant 0 : index
    %c1 = arith.constant 1 : index
    %1 = vector.load %arg7[%c0_1, %c1] : memref<8x7xf32, #tpu.memory_space<vmem>>, vector<8x1xf32>
    %c0_2 = arith.constant 0 : index
    %c2 = arith.constant 2 : index
    %2 = vector.load %arg7[%c0_2, %c2] : memref<8x7xf32, #tpu.memory_space<vmem>>, vector<8x1xf32>
    %c0_3 = arith.constant 0 : index
    %c0_4 = arith.constant 0 : index
    %3 = vector.load %arg1[%c0_3, %c0_4] : memref<256x32xf32, #tpu.memory_space<vmem>>, vector<256x32xf32>
    %4 = tpu.transpose %3, [1, 0] : vector<256x32xf32> -> vector<32x256xf32>
    %c0_5 = arith.constant 0 : index
    %c0_6 = arith.constant 0 : index
    %5 = vector.load %arg2[%c0_5, %c0_6] : memref<8x32xf32, #tpu.memory_space<vmem>>, vector<8x32xf32>
    %cst = arith.constant dense<0.000000e+00> : vector<8x256xf32>
    %6 = tpu.matmul %5, %4, %cst {dimension_numbers = #tpu.dot_dimension_numbers<[1], [0], [0], [1], [0, 0, 1, 1], [], []>} : vector<8x32xf32>, vector<32x256xf32>, vector<8x256xf32> -> vector<8x256xf32>
    %c0_7 = arith.constant 0 : index
    %c0_8 = arith.constant 0 : index
    %7 = vector.load %arg3[%c0_7, %c0_8] : memref<8x1xf32, #tpu.memory_space<vmem>>, vector<8x1xf32>
    %8 = vector.broadcast %7 : vector<8x1xf32> to vector<8x256xf32>
    %9 = arith.addf %6, %8 : vector<8x256xf32>
    %c0_9 = arith.constant 0 : index
    %c3 = arith.constant 3 : index
    %10 = vector.load %arg7[%c0_9, %c3] : memref<8x7xf32, #tpu.memory_space<vmem>>, vector<8x1xf32>
    %c0_10 = arith.constant 0 : index
    %c4 = arith.constant 4 : index
    %11 = vector.load %arg7[%c0_10, %c4] : memref<8x7xf32, #tpu.memory_space<vmem>>, vector<8x1xf32>
    %12 = vector.broadcast %10 : vector<8x1xf32> to vector<8x256xf32>
    %13 = arith.mulf %9, %12 : vector<8x256xf32>
    %14 = vector.broadcast %1 : vector<8x1xf32> to vector<8x256xf32>
    %15 = arith.addf %13, %14 : vector<8x256xf32>
    %16 = math.tanh %15 : vector<8x256xf32>
    %17 = vector.broadcast %0 : vector<8x1xf32> to vector<8x256xf32>
    %18 = arith.mulf %16, %17 : vector<8x256xf32>
    %19 = vector.broadcast %2 : vector<8x1xf32> to vector<8x256xf32>
    %20 = arith.subf %18, %19 : vector<8x256xf32>
    %21 = math.roundeven %20 : vector<8x256xf32>
    %c0_11 = arith.constant 0 : index
    %c0_12 = arith.constant 0 : index
    %22 = vector.load %arg6[%c0_11, %c0_12] : memref<2x8xf32, #tpu.memory_space<vmem>>, vector<2x8xf32>
    %cst_13 = arith.constant dense<0.000000e+00> : vector<2x256xf32>
    %23 = tpu.matmul %22, %21, %cst_13 {dimension_numbers = #tpu.dot_dimension_numbers<[1], [0], [0], [1], [0, 0, 1, 1], [], []>} : vector<2x8xf32>, vector<8x256xf32>, vector<2x256xf32> -> vector<2x256xf32>
    %cst_14 = arith.constant 5.000000e+02 : f32
    %24 = vector.broadcast %cst_14 : f32 to vector<2x256xf32>
    %25 = arith.addf %23, %24 : vector<2x256xf32>
    %26 = math.roundeven %25 : vector<2x256xf32>
    %27 = arith.fptosi %26 : vector<2x256xf32> to vector<2x256xi32>
    %c0_15 = arith.constant 0 : index
    %c0_16 = arith.constant 0 : index
    %28 = vector.load %arg9[%c0_15, %c0_16] : memref<4x256xi32, #tpu.memory_space<vmem>>, vector<2x256xi32>
    tpu.vector_store %arg9[%c0_15, %c0_16], %27 {strides = array<i32>} : memref<4x256xi32, #tpu.memory_space<vmem>>, vector<2x256xi32>,
    %29 = vector.broadcast %11 : vector<8x1xf32> to vector<8x256xf32>
    %30 = arith.mulf %21, %29 : vector<8x256xf32>
    %31 = arith.subf %9, %30 : vector<8x256xf32>
    %c0_17 = arith.constant 0 : index
    %c5 = arith.constant 5 : index
    %32 = vector.load %arg7[%c0_17, %c5] : memref<8x7xf32, #tpu.memory_space<vmem>>, vector<8x1xf32>
    %c0_18 = arith.constant 0 : index
    %c6 = arith.constant 6 : index
    %33 = vector.load %arg7[%c0_18, %c6] : memref<8x7xf32, #tpu.memory_space<vmem>>, vector<8x1xf32>
    %34 = vector.broadcast %32 : vector<8x1xf32> to vector<8x256xf32>
    %35 = arith.mulf %31, %34 : vector<8x256xf32>
    %36 = vector.broadcast %1 : vector<8x1xf32> to vector<8x256xf32>
    %37 = arith.addf %35, %36 : vector<8x256xf32>
    %38 = math.tanh %37 : vector<8x256xf32>
    %39 = vector.broadcast %0 : vector<8x1xf32> to vector<8x256xf32>
    %40 = arith.mulf %38, %39 : vector<8x256xf32>
    %41 = vector.broadcast %2 : vector<8x1xf32> to vector<8x256xf32>
    %42 = arith.subf %40, %41 : vector<8x256xf32>
    %43 = math.roundeven %42 : vector<8x256xf32>
    %c0_19 = arith.constant 0 : index
    %c0_20 = arith.constant 0 : index
    %44 = vector.load %arg6[%c0_19, %c0_20] : memref<2x8xf32, #tpu.memory_space<vmem>>, vector<2x8xf32>
    %cst_21 = arith.constant dense<0.000000e+00> : vector<2x256xf32>
    %45 = tpu.matmul %44, %43, %cst_21 {dimension_numbers = #tpu.dot_dimension_numbers<[1], [0], [0], [1], [0, 0, 1, 1], [], []>} : vector<2x8xf32>, vector<8x256xf32>, vector<2x256xf32> -> vector<2x256xf32>
    %cst_22 = arith.constant 5.000000e+02 : f32
    %46 = vector.broadcast %cst_22 : f32 to vector<2x256xf32>
    %47 = arith.addf %45, %46 : vector<2x256xf32>
    %48 = math.roundeven %47 : vector<2x256xf32>
    %49 = arith.fptosi %48 : vector<2x256xf32> to vector<2x256xi32>
    %c2_23 = arith.constant 2 : index
    %c0_24 = arith.constant 0 : index
    %50 = vector.load %arg9[%c2_23, %c0_24] : memref<4x256xi32, #tpu.memory_space<vmem>>, vector<2x256xi32>
    tpu.vector_store %arg9[%c2_23, %c0_24], %49 {strides = array<i32>} : memref<4x256xi32, #tpu.memory_space<vmem>>, vector<2x256xi32>,
    %51 = vector.broadcast %33 : vector<8x1xf32> to vector<8x256xf32>
    %52 = arith.mulf %43, %51 : vector<8x256xf32>
    %53 = arith.subf %31, %52 : vector<8x256xf32>
    %54 = arith.subf %9, %53 : vector<8x256xf32>
    %c0_25 = arith.constant 0 : index
    %c0_26 = arith.constant 0 : index
    %55 = vector.load %arg4[%c0_25, %c0_26] : memref<32x8xf32, #tpu.memory_space<vmem>>, vector<32x8xf32>
    %cst_27 = arith.constant dense<0.000000e+00> : vector<32x256xf32>
    %56 = tpu.matmul %55, %54, %cst_27 {dimension_numbers = #tpu.dot_dimension_numbers<[1], [0], [0], [1], [0, 0, 1, 1], [], []>} : vector<32x8xf32>, vector<8x256xf32>, vector<32x256xf32> -> vector<32x256xf32>
    %c0_28 = arith.constant 0 : index
    %c0_29 = arith.constant 0 : index
    %57 = vector.load %arg5[%c0_28, %c0_29] : memref<32x1xf32, #tpu.memory_space<vmem>>, vector<32x1xf32>
    %58 = vector.broadcast %57 : vector<32x1xf32> to vector<32x256xf32>
    %59 = arith.addf %56, %58 : vector<32x256xf32>
    %60 = tpu.transpose %59, [1, 0] : vector<32x256xf32> -> vector<256x32xf32>
    %c0_30 = arith.constant 0 : index
    %c0_31 = arith.constant 0 : index
    %61 = vector.load %arg8[%c0_30, %c0_31] : memref<256x32xf32, #tpu.memory_space<vmem>>, vector<256x32xf32>
    tpu.vector_store %arg8[%c0_30, %c0_31], %60 {strides = array<i32>} : memref<256x32xf32, #tpu.memory_space<vmem>>, vector<256x32xf32>,
    return
  }
  func.func @transform_0(%arg0: i32) -> (i32, i32) {
    %c0_i32 = arith.constant 0 : i32
    %c0_i32_0 = arith.constant 0 : i32
    return %arg0, %c0_i32 : i32, i32
  }
  func.func @transform_1(%arg0: i32) -> (i32, i32) {
    %c0_i32 = arith.constant 0 : i32
    %c0_i32_0 = arith.constant 0 : i32
    %c0_i32_1 = arith.constant 0 : i32
    return %c0_i32, %c0_i32_0 : i32, i32
  }
  func.func @transform_2(%arg0: i32) -> (i32, i32) {
    %c0_i32 = arith.constant 0 : i32
    %c0_i32_0 = arith.constant 0 : i32
    %c0_i32_1 = arith.constant 0 : i32
    return %c0_i32, %c0_i32_0 : i32, i32
  }
  func.func @transform_3(%arg0: i32) -> (i32, i32) {
    %c0_i32 = arith.constant 0 : i32
    %c0_i32_0 = arith.constant 0 : i32
    %c0_i32_1 = arith.constant 0 : i32
    return %c0_i32, %c0_i32_0 : i32, i32
  }
  func.func @transform_4(%arg0: i32) -> (i32, i32) {
    %c0_i32 = arith.constant 0 : i32
    %c0_i32_0 = arith.constant 0 : i32
    %c0_i32_1 = arith.constant 0 : i32
    return %c0_i32, %c0_i32_0 : i32, i32
  }
  func.func @transform_5(%arg0: i32) -> (i32, i32) {
    %c0_i32 = arith.constant 0 : i32
    %c0_i32_0 = arith.constant 0 : i32
    %c0_i32_1 = arith.constant 0 : i32
    return %c0_i32, %c0_i32_0 : i32, i32
  }
  func.func @transform_6(%arg0: i32) -> (i32, i32) {
    %c0_i32 = arith.constant 0 : i32
    %c0_i32_0 = arith.constant 0 : i32
    %c0_i32_1 = arith.constant 0 : i32
    return %c0_i32, %c0_i32_0 : i32, i32
  }
  func.func @transform_7(%arg0: i32) -> (i32, i32) {
    %c0_i32 = arith.constant 0 : i32
    %c0_i32_0 = arith.constant 0 : i32
    return %arg0, %c0_i32 : i32, i32
  }
  func.func @transform_8(%arg0: i32) -> (i32, i32) {
    %c0_i32 = arith.constant 0 : i32
    %c0_i32_0 = arith.constant 0 : i32
    return %c0_i32, %arg0 : i32, i32
  }
}

</mosaic_0001>

<bundles_post_ra>
// kernel: tpu_custom_call.1
= control target key start
LH: loop header
LB: loop body
LE: loop exit
PB: predicated region body
PF: predicated region fallthrough
CT: control target
= control target key end

     0   :  { %vm69_vm0 = vcmask 261120   ;;  %v896_v7 = vmov 0   ;;  %v897_v10 = vmov 1   ;;  %s1285_s0 = inlined_call_operand.vmem [shape: f32[256,32], index: 0, kind: input, shape index: {}]   ;;  %s1286_s1 = inlined_call_operand.vmem [shape: f32[8,32], index: 1, kind: input, shape index: {}]   ;;  %s1287_s2 = inlined_call_operand.vmem [shape: f32[8,1], index: 2, kind: input, shape index: {}]   ;;  %s1288_s3 = inlined_call_operand.vmem [shape: f32[32,8], index: 3, kind: input, shape index: {}]   ;;  %s1289_s4 = inlined_call_operand.vmem [shape: f32[32,1], index: 4, kind: input, shape index: {}]   ;;  %s1290_s5 = inlined_call_operand.vmem [shape: f32[2,8], index: 5, kind: input, shape index: {}]   ;;  %s1291_s6 = inlined_call_operand.vmem [shape: f32[8,7], index: 6, kind: input, shape index: {}]   ;;  %s1292_s7 = inlined_call_operand.vmem [shape: f32[256,32], index: 7, kind: output, shape index: {0}]   ;;  %s1293_s8 = inlined_call_operand.hbm [shape: s32[4,256], index: 8, kind: output, shape index: {1}]  }
   0x1   :  { %v46_v0 = vld [vmem:[%s1285_s0 + $0x80] sm:$0xff]  ;;  %v47_v1 = vld [vmem:[%s1285_s0 + $0x88] sm:$0xff]  ;;  %vm961_vm1 = vmpackc.low %vm69_vm0, %vm69_vm0  ;;  %854 = vset.pattern.permute.xlu0 %v896_v7  ;;  %856 = vset.pattern.permute.xlu1 %v897_v10 }
   0x2   :  { %v30_v2 = vld [vmem:[%s1285_s0] sm:$0xff]  ;;  %v781_v3 = vpack.c.bf16 %v47_v1, %v46_v0  ;;  %v31_v5 = vld [vmem:[%s1285_s0 + $0x8] sm:$0xff]  ;;  %v48_v6 = vld [vmem:[%s1285_s0 + $0x90] sm:$0xff] }
   0x3   :  { %v784_v8 = vpack.c.bf16 %v31_v5, %v30_v2  ;;  %v49_v9 = vld [vmem:[%s1285_s0 + $0x98] sm:$0xff]  ;;  %v32_v12 = vld [vmem:[%s1285_s0 + $0x10] sm:$0xff]  ;;  %v50_v14 = vld [vmem:[%s1285_s0 + $0xa0] sm:$0xff] }
   0x4   :  { %783 = vmatprep.subr.msk.bf16.mxu0 %vm961_vm1, %v781_v3  ;;  %v787_v11 = vpack.c.bf16 %v49_v9, %v48_v6  ;;  %v33_v13 = vld [vmem:[%s1285_s0 + $0x18] sm:$0xff]  ;;  %v51_v15 = vld [vmem:[%s1285_s0 + $0xa8] sm:$0xff]  ;;  %v996_v18 = vld [vmem:[%s1286_s1] sm:$0xff] }
   0x5   :  { %786 = vmatpush3.bf16.xpose.msk.msra.mxu0 %vm961_vm1, %v784_v8  ;;  %v790_v16 = vpack.c.bf16 %v33_v13, %v32_v12  ;;  %v793_v17 = vpack.c.bf16 %v51_v15, %v50_v14  ;;  %v63_v19 = vld [vmem:[%s1287_s2] sm:$0xff]  ;;  %779 = vmatprep.mubr.msk.f32.mxu0 %vm69_vm0, %v996_v18 }
   0x6   :  { %789 = vmatprep.subr.msk.bf16.mxu0 %vm961_vm1, %v787_v11 }
   0xd   :  { %792 = vmatpush3.bf16.xpose.msk.msra.mxu0 %vm961_vm1, %v790_v16 }
   0xe   :  { %14 = vsyncpa [#allocation3], 0  ;;  %795 = vmatprep.subr.msk.bf16.mxu0 %vm961_vm1, %v793_v17  ;;  %v34_v20 = vld [vmem:[%s1285_s0 + $0x20] sm:$0xff]  ;;  %v35_v21 = vld [vmem:[%s1285_s0 + $0x28] sm:$0xff]  ;;  %66 = vperm.xlu0 %854, %v63_v19   ;;  %v898_v27 = vmov 3   ;;  %v899_v32 = vmov 4  }
   0xf   :  { %v29_v22 = vld [vmem:[%s1291_s6] sm:$0xff]  ;;  %v52_v23 = vld [vmem:[%s1285_s0 + $0xb0] sm:$0xff]  ;;  %v53_v24 = vld [vmem:[%s1285_s0 + $0xb8] sm:$0xff]  ;;  %v796_v25 = vpack.c.bf16 %v35_v21, %v34_v20  ;;  %v900_v33 = vmov 2   ;;  %v901_v36 = vmov 5   ;;  %v902_v43 = vmov 6  }
  0x10   :  { %248 = vperm.xlu1 %856, %v29_v22   ;;  %v799_v26 = vpack.c.bf16 %v53_v24, %v52_v23  ;;  %v36_v28 = vld [vmem:[%s1285_s0 + $0x30] sm:$0xff]  ;;  %v37_v29 = vld [vmem:[%s1285_s0 + $0x38] sm:$0xff]  ;;  %v54_v30 = vld [vmem:[%s1285_s0 + $0xc0] sm:$0xff]  ;;  %v903_v59 = vmov 0.0   ;;  %vm270_vm2 = vcmask 64512  }
  0x11   :  { %v55_v31 = vld [vmem:[%s1285_s0 + $0xc8] sm:$0xff]  ;;  %v802_v34 = vpack.c.bf16 %v37_v29, %v36_v28  ;;  %v38_v37 = vld [vmem:[%s1285_s0 + $0x40] sm:$0xff]  ;;  %v56_v39 = vld [vmem:[%s1285_s0 + $0xd0] sm:$0xff]  ;;  %338 = vmatprep.mubr.f32.mxu1 %v903_v59 }
  0x12   :  { %855 = vset.pattern.permute.xlu0 %v898_v27  ;;  %v805_v35 = vpack.c.bf16 %v55_v31, %v54_v30  ;;  %v39_v38 = vld [vmem:[%s1285_s0 + $0x48] sm:$0xff]  ;;  %v57_v40 = vld [vmem:[%s1285_s0 + $0xd8] sm:$0xff]  ;;  %v40_v44 = vld [vmem:[%s1285_s0 + $0x50] sm:$0xff] }
  0x13   :  { %242 = vperm.xlu0 %855, %v29_v22   ;;  %v808_v41 = vpack.c.bf16 %v39_v38, %v38_v37  ;;  %v811_v42 = vpack.c.bf16 %v57_v40, %v56_v39  ;;  %v41_v45 = vld [vmem:[%s1285_s0 + $0x58] sm:$0xff]  ;;  %v58_v46 = vld [vmem:[%s1285_s0 + $0xe0] sm:$0xff]  ;;  %v59_v47 = vld [vmem:[%s1285_s0 + $0xe8] sm:$0xff] }
  0x14   :  { %857 = vset.pattern.permute.xlu1 %v896_v7  ;;  %v814_v48 = vpack.c.bf16 %v41_v45, %v40_v44  ;;  %v817_v49 = vpack.c.bf16 %v59_v47, %v58_v46  ;;  %v42_v50 = vld [vmem:[%s1285_s0 + $0x60] sm:$0xff]  ;;  %v43_v51 = vld [vmem:[%s1285_s0 + $0x68] sm:$0xff]  ;;  %v60_v52 = vld [vmem:[%s1285_s0 + $0xf0] sm:$0xff] }
  0x15   :  { %256 = vperm.xlu1 %857, %v29_v22   ;;  %798 = vmatpush3.bf16.xpose.msk.msra.mxu0 %vm961_vm1, %v796_v25  ;;  %v61_v53 = vld [vmem:[%s1285_s0 + $0xf8] sm:$0xff]  ;;  %v820_v54 = vpack.c.bf16 %v43_v51, %v42_v50  ;;  %v44_v56 = vld [vmem:[%s1285_s0 + $0x70] sm:$0xff]  ;;  %v469_v60 = vld [vmem:[%s1289_s4] sm:$0xff] }
  0x16   :  { %801 = vmatprep.subr.msk.bf16.mxu0 %vm961_vm1, %v799_v26  ;;  %v823_v55 = vpack.c.bf16 %v61_v53, %v60_v52  ;;  %v45_v57 = vld [vmem:[%s1285_s0 + $0x78] sm:$0xff]  ;;  %v470_v61 = vld [vmem:[%s1289_s4 + $0x8] sm:$0xff]  ;;  %v471_v63 = vld [vmem:[%s1289_s4 + $0x10] sm:$0xff] }
  0x17   :  { %859 = vset.pattern.permute.xlu0 %v899_v32  ;;  %v826_v58 = vpack.c.bf16 %v45_v57, %v44_v56  ;;  %v472_v62 = vld [vmem:[%s1289_s4 + $0x18] sm:$0xff]  ;;  %v269_v23 = vld [vmem:[%s1290_s5] sm:$0x3]  ;;  %v467_v50 = vld [vmem:[%s1288_s3 + $0x10] sm:$0xff] }
  0x18   :  { %350 = vperm.xlu0 %859, %v29_v22   ;;  %v468_v51 = vld [vmem:[%s1288_s3 + $0x18] sm:$0xff] }
  0x19   :  { %858 = vset.pattern.permute.xlu1 %v900_v33 }
  0x1a   :  { %262 = vperm.xlu1 %858, %v29_v22  }
  0x1c   :  { %862 = vset.pattern.permute.xlu0 %v896_v7 }
  0x1d   :  { %804 = vmatpush3.bf16.xpose.msk.msra.mxu0 %vm961_vm1, %v802_v34  ;;  %475 = vperm.xlu0 %862, %v469_v60  }
  0x1e   :  { %860 = vset.pattern.permute.xlu1 %v901_v36  ;;  %807 = vmatprep.subr.msk.bf16.mxu0 %vm961_vm1, %v805_v35 }
  0x1f   :  { %360 = vperm.xlu1 %860, %v29_v22  }
  0x21   :  { %490 = vperm.xlu0 %862, %v472_v62  }
  0x23   :  { %861 = vset.pattern.permute.xlu1 %v902_v43 }
  0x24   :  { %456 = vperm.xlu1 %861, %v29_v22  }
  0x25   :  { %810 = vmatpush3.bf16.xpose.msk.msra.mxu0 %vm961_vm1, %v808_v41 }
  0x26   :  { %813 = vmatprep.subr.msk.bf16.mxu0 %vm961_vm1, %v811_v42  ;;  %v375_v42 = vld [vmem:[%s1290_s5] sm:$0x3] }
  0x28   :  { %863 = vset.pattern.permute.xlu1 %v896_v7 }
  0x29   :  { %480 = vperm.xlu1 %863, %v470_v61  }
  0x2d   :  { %816 = vmatpush3.bf16.xpose.msk.msra.mxu0 %vm961_vm1, %v814_v48  ;;  %485 = vperm.xlu1 %863, %v471_v63   ;;  %v465_v48 = vld [vmem:[%s1288_s3] sm:$0xff] }
  0x2e   :  { %819 = vmatprep.subr.msk.bf16.mxu0 %vm961_vm1, %v817_v49  ;;  %v466_v49 = vld [vmem:[%s1288_s3 + $0x8] sm:$0xff]  ;;  %s904_s3 = smov [#allocation2]  }
  0x2f   :  { %s698_s17 = sshll.u32 %s904_s3, 4  ;;  %s699_s17 = int_to_ptr.vmem [resolvable:$true] %s698_s17 }
  0x30   :  { %s872_s18 = scalar_lea.vmem %s699_s17, 128  ;;  %p877_p1 = scmp.lt.s32.totalorder %s699_s17, %s699_s17 }
  0x31   :  { %p873_p0 = scmp.ne.s32.totalorder %s699_s17, %s872_s18  ;;  %p878_p2 = scmp.lt.s32.totalorder %s872_s18, %s872_s18 }
  0x33   :  { %p879_p3 = por %p878_p2, %p877_p1 }
  0x35   :  { %822 = vmatpush3.bf16.xpose.msk.msra.mxu0 %vm961_vm1, %v820_v54  ;;  %p880_p4 = pnand %p879_p3, %p873_p0 }
  0x36   :  { %825 = vmatprep.subr.msk.bf16.mxu0 %vm961_vm1, %v823_v55 }
  0x3d   :  { %828 = vmatpush3.bf16.xpose.msk.msra.mxu0 %vm961_vm1, %v826_v58 }
  0x44   :  { %780 = vmatmul.mubr.msk.f32.vlgmr.msra.gmra.mrb[0].mxu0 %vm69_vm0, %v996_v18 }
  0x8d   :  { %v67_v0 = vpop.permute.xlu0 %66 }
  0x8f   :  { %v249_v6 = vpop.permute.xlu1 %248 }
  0x92   :  { %v243_v2 = vpop.permute.xlu0 %242 }
  0x94   :  { %v257_v11 = vpop.permute.xlu1 %256 }
  0x97   :  { %v351_v18 = vpop.permute.xlu0 %350 }
  0x99   :  { %v263_v13 = vpop.permute.xlu1 %262 }
  0x9e   :  { %v361_v25 = vpop.permute.xlu1 %360 }
  0xa3   :  { %v457_v37 = vpop.permute.xlu1 %456 }
 0x117   :  { %v235_v1 = vpop.f32.mrb[0].mxu0 }
 0x118   :  { %v236_v3 = vadd.f32 %v235_v1, %v67_v0  ;;  %v237_v4 = vpop.f32.mrb[1].mxu0 }
 0x119   :  { %v238_v5 = vadd.f32 %v237_v4, %v67_v0 }
 0x11a   :  { %v245_v7 = vmul.f32 %v243_v2, %v236_v3 }
 0x11b   :  { %v246_v8 = vmul.f32 %v243_v2, %v238_v5 }
 0x11c   :  { %v251_v9 = vadd.f32 %v249_v6, %v245_v7 }
 0x11d   :  { %v252_v10 = vadd.f32 %v249_v6, %v246_v8  ;;  %v481_v8 = vpop.permute.xlu1 %480 }
 0x11e   :  { %864 = vtanh.f32 %v251_v9 }
 0x11f   :  { %866 = vtanh.f32 %v252_v10 }
 0x128   :  { %v865_v12 = vpop.eup %864 }
 0x129   :  { %v867_v14 = vpop.eup %866  ;;  %v259_v15 = vmul.f32 %v865_v12, %v257_v11 }
 0x12a   :  { %v260_v16 = vmul.f32 %v867_v14, %v257_v11 }
 0x12b   :  { %v265_v17 = vsub.f32 %v259_v15, %v263_v13 }
 0x12c   :  { %v266_v19 = vsub.f32 %v260_v16, %v263_v13 }
 0x12d   :  { %v829_v20 = vround.rtne.f32 %v265_v17 }
 0x12e   :  { %v830_v21 = vround.rtne.f32 %v266_v19 }
 0x12f   :  { %v353_v22 = vmul.f32 %v829_v20, %v351_v18 }
 0x130   :  { %274 = vmatprep.subr.mxu1 %v830_v21  ;;  %v354_v24 = vmul.f32 %v830_v21, %v351_v18 }
 0x131   :  { %275 = vmatpush1.msra.mxu1 %v829_v20  ;;  %v355_v26 = vsub.f32 %v236_v3, %v353_v22 }
 0x132   :  { %v356_v27 = vsub.f32 %v238_v5, %v354_v24  ;;  %741 = vmatmul.mubr.msk.f32.vlgmr.msra.gmra.mrb[0].mxu1 %vm270_vm2, %v269_v23 }
 0x133   :  { %v363_v28 = vmul.f32 %v361_v25, %v355_v26  ;;  %443 = vmatprep.mubr.f32.mxu1 %v903_v59 }
 0x134   :  { %v364_v29 = vmul.f32 %v361_v25, %v356_v27 }
 0x135   :  { %v365_v30 = vadd.f32 %v363_v28, %v249_v6 }
 0x136   :  { %v366_v31 = vadd.f32 %v364_v29, %v249_v6 }
 0x137   :  { %868 = vtanh.f32 %v365_v30 }
 0x138   :  { %870 = vtanh.f32 %v366_v31 }
 0x141   :  { %v869_v32 = vpop.eup %868 }
 0x142   :  { %v871_v33 = vpop.eup %870  ;;  %v369_v34 = vmul.f32 %v869_v32, %v257_v11 }
 0x143   :  { %v370_v35 = vmul.f32 %v871_v33, %v257_v11 }
 0x144   :  { %v371_v36 = vsub.f32 %v369_v34, %v263_v13 }
 0x145   :  { %v372_v38 = vsub.f32 %v370_v35, %v263_v13  ;;  %v486_v13 = vpop.permute.xlu1 %485 }
 0x146   :  { %v837_v39 = vround.rtne.f32 %v371_v36 }
 0x147   :  { %v838_v40 = vround.rtne.f32 %v372_v38 }
 0x148   :  { %v459_v41 = vmul.f32 %v837_v39, %v457_v37 }
 0x149   :  { %v460_v43 = vmul.f32 %v838_v40, %v457_v37  ;;  %379 = vmatprep.subr.mxu1 %v838_v40 }
 0x14a   :  { %v461_v44 = vsub.f32 %v355_v26, %v459_v41  ;;  %380 = vmatpush1.msra.mxu1 %v837_v39 }
 0x14b   :  { %v462_v45 = vsub.f32 %v356_v27, %v460_v43  ;;  %742 = vmatmul.mubr.msk.f32.vlgmr.msra.gmra.mrb[2].mxu1 %vm270_vm2, %v375_v42 }
 0x14c   :  { %569 = vmatprep.mubr.f32.mxu1 %v903_v59  ;;  %v463_v47 = vsub.f32 %v236_v3, %v461_v44  ;;  %v476_v3 = vpop.permute.xlu0 %475 }
 0x14d   :  { %v464_v46 = vsub.f32 %v238_v5, %v462_v45 }
 0x14f   :  { %505 = vmatprep.subr.mxu1 %v464_v46 }
 0x150   :  { %506 = vmatpush1.msra.mxu1 %v463_v47  ;;  %v491_v18 = vpop.permute.xlu0 %490 }
 0x151   :  { %743 = vmatmul.mubr.msk.f32.vlgmr.msra.gmra.mrb[4].mxu1 %vm270_vm2, %v465_v48 }
 0x152   :  { %575 = vmatprep.mubr.f32.mxu1 %v903_v59 }
 0x155   :  { %744 = vmatmul.mubr.msk.f32.gmra.mrb[6].mxu1 %vm270_vm2, %v466_v49 }
 0x156   :  { %581 = vmatprep.mubr.f32.mxu1 %v903_v59 }
 0x159   :  { %745 = vmatmul.mubr.msk.f32.gmra.mrb[8].mxu1 %vm270_vm2, %v467_v50 }
 0x15a   :  { %587 = vmatprep.mubr.f32.mxu1 %v903_v59 }
 0x15d   :  { %746 = vmatmul.mubr.msk.f32.gmra.mrb[10].mxu1 %vm270_vm2, %v468_v51 }
 0x205   :  { %v340_v52 = vpop.f32.mrb[0].mxu1 }
 0x206   :  { %v341_v53 = vadd.f32 500.0, %v340_v52  ;;  %v342_v54 = vpop.f32.mrb[1].mxu1 }
 0x207   :  { %v343_v55 = vadd.f32 500.0, %v342_v54 }
 0x208   :  { %v833_v56 = vcvt.f32.s32 %v341_v53 }
 0x209   :  { %v836_v57 = vcvt.f32.s32 %v343_v55 }
 0x20b   :  { %v347_v58 = vcombine.low %v833_v56, %v836_v57 }
 0x20d   :  { %348 = vst [vmem:[#allocation2] sm:$0x33] %v347_v58 }
 0x21e   :  { %v445_v60 = vpop.f32.mrb[2].mxu1 }
 0x21f   :  { %v446_v61 = vadd.f32 500.0, %v445_v60  ;;  %v447_v62 = vpop.f32.mrb[3].mxu1 }
 0x220   :  { %v448_v63 = vadd.f32 500.0, %v447_v62 }
 0x221   :  { %v841_v0 = vcvt.f32.s32 %v446_v61 }
 0x222   :  { %v844_v59 = vcvt.f32.s32 %v448_v63 }
 0x224   :  { %v452_v1 = vcombine.low %v841_v0, %v844_v59  ;;  %v571_v2 = vpop.f32.mrb[4].mxu1 }
 0x225   :  { %v572_v4 = vadd.f32 %v571_v2, %v476_v3  ;;  %v573_v5 = vpop.f32.mrb[5].mxu1 }
 0x226   :  { %v453_v6 = vrot.slane %v452_v1, 6  ;;  %v574_v7 = vadd.f32 %v573_v5, %v476_v3 }
 0x227   :  { %594 = vxpose.xlu1.b32.start [1/4] (short) %v572_v4, 128 }
 0x228   :  { %454 = vst [vmem:[#allocation2] sm:$0xcc] %v453_v6  ;;  %v577_v9 = vpop.f32.mrb[6].mxu1  ;;  %626 = vxpose.xlu0.b32.start [1/4] (short) %v574_v7, 128 }
 0x229   :  { %v578_v10 = vadd.f32 %v577_v9, %v481_v8  ;;  %v579_v11 = vpop.f32.mrb[7].mxu1 }
 0x22a   :  { %v580_v12 = vadd.f32 %v579_v11, %v481_v8 }
 0x22b   :  { %595 = vxpose.xlu1.b32.cont [2/4] (short) %v578_v10, 128 }
 0x22c   :  { %v583_v14 = vpop.f32.mrb[8].mxu1  ;;  %627 = vxpose.xlu0.b32.cont [2/4] (short) %v580_v12, 128 }
 0x22d   :  { %v584_v15 = vadd.f32 %v583_v14, %v486_v13  ;;  %v585_v16 = vpop.f32.mrb[9].mxu1 }
 0x22e   :  { %v586_v17 = vadd.f32 %v585_v16, %v486_v13 }
 0x22f   :  { %596 = vxpose.xlu1.b32.cont [3/4] (short) %v584_v15, 128 }
 0x230   :  { %v589_v19 = vpop.f32.mrb[10].mxu1  ;;  %628 = vxpose.xlu0.b32.cont [3/4] (short) %v586_v17, 128 }
 0x231   :  { %v590_v20 = vadd.f32 %v589_v19, %v491_v18  ;;  %v591_v21 = vpop.f32.mrb[11].mxu1 }
 0x232   :  { %v592_v22 = vadd.f32 %v591_v21, %v491_v18 }
 0x233   :  { %597 = vxpose.xlu1.b32.end [4/4] (short) %v590_v20, 128 }
 0x234   :  { %629 = vxpose.xlu0.b32.end [4/4] (short) %v592_v22, 128 }
 0x235   :  { %883 = shalt.err (!%p880_p4)
}
 0x236   :  { %s884_s21 = scalar_lea.hbm %s1293_s8, 128 }
 0x237   :  { %p885_p5 = scmp.ne.s32.totalorder %s1293_s8, %s884_s21  ;;  %p888_p6 = scmp.lt.u32.totalorder %s884_s21, %s1293_s8 }
 0x239   :  { %p890_p7 = pnand %p888_p6, %p885_p5 }
 0x23b   :  { %893 = shalt.err (!%p890_p7)
}
 0x23c   :  { %701 = dma.vmem_to_hbm [thread:$0]  %s699_s17, 128, %s1293_s8, [#allocation3]  }
 0x2a7   :  { %v610_v23 = vpop.trf.xlu1 }
 0x2a8   :  { %v642_v24 = vpop.trf.xlu0  ;;  %658 = vst.msk [vmem:[%s1292_s7] sm:$0xff] %vm69_vm0, %v610_v23 }
 0x2a9   :  { %674 = vst.msk [vmem:[%s1292_s7 + $0x80] sm:$0xff] %vm69_vm0, %v642_v24 }
 0x2ab   :  { %v611_v25 = vpop.trf.xlu1 }
 0x2ac   :  { %v643_v26 = vpop.trf.xlu0  ;;  %659 = vst.msk [vmem:[%s1292_s7 + $0x8] sm:$0xff] %vm69_vm0, %v611_v25 }
 0x2ad   :  { %675 = vst.msk [vmem:[%s1292_s7 + $0x88] sm:$0xff] %vm69_vm0, %v643_v26 }
 0x2af   :  { %v612_v27 = vpop.trf.xlu1 }
 0x2b0   :  { %v644_v28 = vpop.trf.xlu0  ;;  %660 = vst.msk [vmem:[%s1292_s7 + $0x10] sm:$0xff] %vm69_vm0, %v612_v27 }
 0x2b1   :  { %676 = vst.msk [vmem:[%s1292_s7 + $0x90] sm:$0xff] %vm69_vm0, %v644_v28 }
 0x2b3   :  { %v613_v29 = vpop.trf.xlu1 }
 0x2b4   :  { %v645_v30 = vpop.trf.xlu0  ;;  %661 = vst.msk [vmem:[%s1292_s7 + $0x18] sm:$0xff] %vm69_vm0, %v613_v29 }
 0x2b5   :  { %677 = vst.msk [vmem:[%s1292_s7 + $0x98] sm:$0xff] %vm69_vm0, %v645_v30 }
 0x2b7   :  { %v614_v31 = vpop.trf.xlu1 }
 0x2b8   :  { %v646_v32 = vpop.trf.xlu0  ;;  %662 = vst.msk [vmem:[%s1292_s7 + $0x20] sm:$0xff] %vm69_vm0, %v614_v31 }
 0x2b9   :  { %678 = vst.msk [vmem:[%s1292_s7 + $0xa0] sm:$0xff] %vm69_vm0, %v646_v32 }
 0x2bb   :  { %v615_v33 = vpop.trf.xlu1 }
 0x2bc   :  { %v647_v34 = vpop.trf.xlu0  ;;  %663 = vst.msk [vmem:[%s1292_s7 + $0x28] sm:$0xff] %vm69_vm0, %v615_v33 }
 0x2bd   :  { %679 = vst.msk [vmem:[%s1292_s7 + $0xa8] sm:$0xff] %vm69_vm0, %v647_v34 }
 0x2bf   :  { %v616_v35 = vpop.trf.xlu1 }
 0x2c0   :  { %v648_v36 = vpop.trf.xlu0  ;;  %664 = vst.msk [vmem:[%s1292_s7 + $0x30] sm:$0xff] %vm69_vm0, %v616_v35 }
 0x2c1   :  { %680 = vst.msk [vmem:[%s1292_s7 + $0xb0] sm:$0xff] %vm69_vm0, %v648_v36 }
 0x2c3   :  { %v617_v37 = vpop.trf.xlu1 }
 0x2c4   :  { %v649_v38 = vpop.trf.xlu0  ;;  %665 = vst.msk [vmem:[%s1292_s7 + $0x38] sm:$0xff] %vm69_vm0, %v617_v37 }
 0x2c5   :  { %681 = vst.msk [vmem:[%s1292_s7 + $0xb8] sm:$0xff] %vm69_vm0, %v649_v38 }
 0x2c7   :  { %v618_v39 = vpop.trf.xlu1 }
 0x2c8   :  { %v650_v40 = vpop.trf.xlu0  ;;  %666 = vst.msk [vmem:[%s1292_s7 + $0x40] sm:$0xff] %vm69_vm0, %v618_v39 }
 0x2c9   :  { %682 = vst.msk [vmem:[%s1292_s7 + $0xc0] sm:$0xff] %vm69_vm0, %v650_v40 }
 0x2cb   :  { %v619_v41 = vpop.trf.xlu1 }
 0x2cc   :  { %v651_v42 = vpop.trf.xlu0  ;;  %667 = vst.msk [vmem:[%s1292_s7 + $0x48] sm:$0xff] %vm69_vm0, %v619_v41 }
 0x2cd   :  { %683 = vst.msk [vmem:[%s1292_s7 + $0xc8] sm:$0xff] %vm69_vm0, %v651_v42 }
 0x2cf   :  { %v620_v43 = vpop.trf.xlu1 }
 0x2d0   :  { %v652_v44 = vpop.trf.xlu0  ;;  %668 = vst.msk [vmem:[%s1292_s7 + $0x50] sm:$0xff] %vm69_vm0, %v620_v43 }
 0x2d1   :  { %684 = vst.msk [vmem:[%s1292_s7 + $0xd0] sm:$0xff] %vm69_vm0, %v652_v44 }
 0x2d3   :  { %v621_v45 = vpop.trf.xlu1 }
 0x2d4   :  { %v653_v46 = vpop.trf.xlu0  ;;  %669 = vst.msk [vmem:[%s1292_s7 + $0x58] sm:$0xff] %vm69_vm0, %v621_v45 }
 0x2d5   :  { %685 = vst.msk [vmem:[%s1292_s7 + $0xd8] sm:$0xff] %vm69_vm0, %v653_v46 }
 0x2d7   :  { %v622_v47 = vpop.trf.xlu1 }
 0x2d8   :  { %v654_v48 = vpop.trf.xlu0  ;;  %670 = vst.msk [vmem:[%s1292_s7 + $0x60] sm:$0xff] %vm69_vm0, %v622_v47 }
 0x2d9   :  { %686 = vst.msk [vmem:[%s1292_s7 + $0xe0] sm:$0xff] %vm69_vm0, %v654_v48 }
 0x2db   :  { %v623_v49 = vpop.trf.xlu1 }
 0x2dc   :  { %v655_v50 = vpop.trf.xlu0  ;;  %671 = vst.msk [vmem:[%s1292_s7 + $0x68] sm:$0xff] %vm69_vm0, %v623_v49 }
 0x2dd   :  { %687 = vst.msk [vmem:[%s1292_s7 + $0xe8] sm:$0xff] %vm69_vm0, %v655_v50 }
 0x2df   :  { %v624_v51 = vpop.trf.xlu1 }
 0x2e0   :  { %v656_v52 = vpop.trf.xlu0  ;;  %672 = vst.msk [vmem:[%s1292_s7 + $0x70] sm:$0xff] %vm69_vm0, %v624_v51 }
 0x2e1   :  { %688 = vst.msk [vmem:[%s1292_s7 + $0xf0] sm:$0xff] %vm69_vm0, %v656_v52 }
 0x2e3   :  { %v625_v53 = vpop.trf.xlu1 }
 0x2e4   :  { %v657_v54 = vpop.trf.xlu0  ;;  %673 = vst.msk [vmem:[%s1292_s7 + $0x78] sm:$0xff] %vm69_vm0, %v625_v53 }
 0x2e5   :  { %689 = vst.msk [vmem:[%s1292_s7 + $0xf8] sm:$0xff] %vm69_vm0, %v657_v54 }
 0x2e6   :  { %894 = dma.done.wait [#allocation3], 128  }
 0x2e7   :  { %895 = vsyncadd [#allocation3], 4294967168 }
 0x2e8   :  { %707 = vsyncpa [#allocation3], 1 }

</bundles_post_ra>
